<compile_context>
chip_gen: v7x
topology: tpu7x:2x2x1
jax: 0.10.0
libtpu: 0.0.40
codegen_flags: <defaults>
</compile_context>

<pallas_src>
import functools

import jax
import jax.numpy as jnp
from jax.experimental import pallas as pl
from jax.experimental.pallas import tpu as pltpu


def _round_up(n: int, m: int) -> int:
    return ((n + m - 1) // m) * m


def _tensorcores_per_chip() -> int:
    """Best-effort TensorCores-per-chip query (v4/v5p/v7x: 2, v5e/v6e: 1)."""
    try:
        dev = jax.devices()[0]
        nc = getattr(dev, "num_cores", None)
        if nc:
            return int(nc)
        kind = str(getattr(dev, "device_kind", "")).lower()
        if ("v4" in kind) or ("v5p" in kind) or ("v7" in kind):
            return 2
    except Exception:
        pass
    return 1


def _vmem_estimate_bytes(blk_p, p, in_dim, hidden, x_itemsize):
    """Rough per-step VMEM footprint (double-buffered tiles + f32 temporaries)."""
    x_tile = 2 * blk_p * p * in_dim * x_itemsize          # double-buffered x tile
    temps = 2 * blk_p * p * hidden * 4                    # h1 + h2 (f32)
    out_tile = 2 * blk_p * 128 * 4                        # (blk_p, p) lane-padded
    weights = 2 * 4 * (p * in_dim * p * hidden + (p * hidden) ** 2
                       + p * hidden * 128 + 2 * p * hidden + 8)
    return x_tile + temps + out_tile + weights


def _mlp_kernel(x_ref, w1_ref, b1_ref, w2_ref, b2_ref, w3_ref, b3_ref, o_ref):
    """Fused 3-layer MLP on one packed batch tile.

    All matmuls accumulate in f32 on the MXU; bias+ReLU run on the VPU.
    Weights are the block-diagonal packed versions, so the last layer is a
    plain (blk_p, p*H) @ (p*H, p) matmul (no XLU transpose of h2).
    """
    cdt = w2_ref.dtype   # compute dtype (f32 or bf16); accumulation stays f32
    h1 = jnp.dot(x_ref[...], w1_ref[...], preferred_element_type=jnp.float32)
    h1 = jnp.maximum(h1 + b1_ref[...], 0.0).astype(cdt)
    h2 = jnp.dot(h1, w2_ref[...], preferred_element_type=jnp.float32)
    h2 = jnp.maximum(h2 + b2_ref[...], 0.0).astype(cdt)
    out = jnp.dot(h2, w3_ref[...], preferred_element_type=jnp.float32)
    o_ref[...] = out + b3_ref[0, 0]


@functools.partial(jax.jit, static_argnames=("block_b", "x_compute_dtype"))
def feed_forward_relevance(x, params, *, block_b=8192, x_compute_dtype=None):
    """x: (B, 2*embedding_dim) -> (B,) float32 relevance scores (torch .squeeze())."""
    w1, b1, w2, b2, w3, b3 = params
    B, in_dim = x.shape
    H = w1.shape[1]

    if x_compute_dtype is not None:
        # NOTE: casting here costs one extra pass over x unless the producer
        # fuses it — prefer handing in bf16 activations directly.
        x = x.astype(x_compute_dtype)
    compute_dtype = x.dtype
    x_isz = jnp.dtype(compute_dtype).itemsize

    # ---- row packing: p rows share the 128 lanes via block-diagonal weights ----
    p = max(1, min(8, 128 // max(in_dim, H)))   # p=4 for 2E=H=32; p=1 falls back
    rem = B % p
    if rem:
        # Only pad to the pack factor (< p rows).  The old pad-to-tile is gone;
        # ragged tiles are handled by Pallas's non-divisible last block.
        x = jnp.pad(x, ((0, p - rem), (0, 0)))
    b_pad = B + (p - rem) % p
    B_p = b_pad // p
    x_packed = x.reshape(B_p, p * in_dim)       # contiguous row-major -> free view

    # ---- block-diagonal packed weights (tiny; built once per compile) ----
    eye = jnp.eye(p, dtype=jnp.float32)
    w1_bd = jnp.kron(eye, w1.astype(jnp.float32)).astype(compute_dtype)   # (p*2E, p*H)
    w2_bd = jnp.kron(eye, w2.astype(jnp.float32)).astype(compute_dtype)   # (p*H,  p*H)
    w3_bd = jnp.kron(eye, w3.astype(jnp.float32)).astype(compute_dtype)   # (p*H,  p)
    b1_bd = jnp.tile(b1.reshape(1, H).astype(jnp.float32), (1, p))        # (1, p*H)
    b2_bd = jnp.tile(b2.reshape(1, H).astype(jnp.float32), (1, p))        # (1, p*H)
    b3_s = b3.reshape(1, 1).astype(jnp.float32)                           # SMEM scalar

    # ---- batch tile size, in packed rows (multiple of 8 sublanes) ----
    blk_p = max(8, (block_b // p) // 8 * 8)
    blk_p = min(blk_p, _round_up(B_p, 8))
    ncores = _tensorcores_per_chip()
    if ncores > 1:
        want_steps = 2 * ncores              # >=2 grid steps per TensorCore (v7x)
        if pl.cdiv(B_p, blk_p) < want_steps and B_p >= want_steps * 8:
            blk_p = _round_up(pl.cdiv(B_p, want_steps), 8)
    VMEM_SOFT_CAP = 38 * (1 << 20)
    while blk_p > 8 and _vmem_estimate_bytes(blk_p, p, in_dim, H, x_isz) > VMEM_SOFT_CAP:
        blk_p = max(8, _round_up(blk_p // 2, 8))

    num_blocks = pl.cdiv(B_p, blk_p)

    est = _vmem_estimate_bytes(blk_p, p, in_dim, H, x_isz)
    vmem_limit = None
    if est > 12 * (1 << 20):    # would be tight under v5e's 16 MiB scoped default
        vmem_limit = int(min(48 << 20, max(32 << 20, est + est // 4)))

    weight_bytes = ((p * in_dim) * (p * H) + (p * H) * (p * H) + (p * H) * p) * x_isz \
        + (2 * p * H + 1) * 4
    cost = pl.CostEstimate(
        flops=2 * b_pad * (in_dim * H + H * H + H),
        transcendentals=0,
        bytes_accessed=b_pad * in_dim * x_isz + weight_bytes + B_p * p * 4,
    )

    out = pl.pallas_call(
        _mlp_kernel,
        out_shape=jax.ShapeDtypeStruct((B_p, p), jnp.float32),
        grid_spec=pltpu.PrefetchScalarGridSpec(
            num_scalar_prefetch=0,
            grid=(num_blocks,),
            in_specs=[
                # streamed packed activation tile (add pipeline_mode=pl.Buffered(3)
                # here if a trace ever shows exposed input DMA)
                pl.BlockSpec((blk_p, p * in_dim), lambda i: (i, 0)),
                # packed weights / biases: whole arrays, resident across the grid
                pl.BlockSpec((p * in_dim, p * H), lambda i: (0, 0)),
                pl.BlockSpec((1, p * H), lambda i: (0, 0)),
                pl.BlockSpec((p * H, p * H), lambda i: (0, 0)),
                pl.BlockSpec((1, p * H), lambda i: (0, 0)),
                pl.BlockSpec((p * H, p), lambda i: (0, 0)),
                # final bias: single scalar in SMEM (no padded VMEM tile)
                pl.BlockSpec(memory_space=pltpu.MemorySpace.SMEM),
            ],
            out_specs=pl.BlockSpec((blk_p, p), lambda i: (i, 0)),
        ),
        compiler_params=pltpu.CompilerParams(
            dimension_semantics=("parallel",),
            vmem_limit_bytes=vmem_limit,
        ),
        cost_estimate=cost,
    )(x_packed, w1_bd, b1_bd, w2_bd, b2_bd, w3_bd, b3_s)

    # out[i, s] is the score of original row i*p + s; row-major flatten restores
    # order; [:B] drops pad/tail rows (matches torch .squeeze()).
    return out.reshape(-1)[:B]


def init_params(key, embedding_dim, hidden_dim):
    """PyTorch-style uniform(-1/sqrt(fan_in), 1/sqrt(fan_in)) init, deterministic."""
    in_dim = embedding_dim * 2
    k = jax.random.split(key, 6)

    def u(rk, shape, fan_in):
        bound = 1.0 / jnp.sqrt(fan_in)
        return jax.random.uniform(rk, shape, jnp.float32, -bound, bound)

    w1 = u(k[0], (in_dim, hidden_dim), in_dim)
    b1 = u(k[1], (1, hidden_dim), in_dim)
    w2 = u(k[2], (hidden_dim, hidden_dim), hidden_dim)
    b2 = u(k[3], (1, hidden_dim), hidden_dim)
    w3 = u(k[4], (hidden_dim, 1), hidden_dim)
    b3 = u(k[5], (1, 1), hidden_dim)
    return (w1, b1, w2, b2, w3, b3)


def reference_forward(x, params):
    w1, b1, w2, b2, w3, b3 = params
    h = jnp.maximum(x @ w1 + b1, 0.0)
    h = jnp.maximum(h @ w2 + b2, 0.0)
    return (h @ w3 + b3)[:, 0]


if __name__ == "__main__":
    # TODO(synk): inputs_to_tensors is host-side data staging (torch.stack/cat);
    # it is not a device kernel and is not translated here.
    embedding_dim = 16   # document/query embedding dim -> input is 2*16 = 32
    hidden_dim = 32

    key = jax.random.PRNGKey(0)
    kx, kp, kx2, kx3 = jax.random.split(key, 4)
    params = init_params(kp, embedding_dim, hidden_dim)

    # Small pack-aligned batch (single tile).
    x = jax.random.normal(kx, (8, embedding_dim * 2), jnp.float32)
    y = jax.block_until_ready(feed_forward_relevance(x, params))
    assert y.shape == (8,), y.shape
    assert jnp.allclose(y, reference_forward(x, params), atol=1e-4, rtol=1e-4)

    # Ragged packed-row count (exercises the non-divisible last block, no pad).
    x2 = jax.random.normal(kx2, (300, embedding_dim * 2), jnp.float32)
    y2 = jax.block_until_ready(feed_forward_relevance(x2, params))
    assert y2.shape == (300,), y2.shape
    assert jnp.allclose(y2, reference_forward(x2, params), atol=1e-4, rtol=1e-4)

    # Batch not divisible by the pack factor (exercises the <=3-row pad path).
    x3 = jax.random.normal(kx3, (13, embedding_dim * 2), jnp.float32)
    y3 = jax.block_until_ready(feed_forward_relevance(x3, params))
    assert y3.shape == (13,), y3.shape
    assert jnp.allclose(y3, reference_forward(x3, params), atol=1e-4, rtol=1e-4)

    # bf16-streamed activations (halves the dominant HBM read); relaxed tolerance.
    xb = x2.astype(jnp.bfloat16)
    yb = jax.block_until_ready(feed_forward_relevance(xb, params))
    assert yb.shape == (300,), yb.shape
    assert jnp.allclose(yb, reference_forward(x2, params), atol=5e-2, rtol=5e-2)

    print("KERNEL_OK")
</pallas_src>

<mosaic_0001>
module attributes {stable_mosaic.version = 11 : i64} {
  func.func @_mlp_kernel(%arg0: i32, %arg1: memref<8x128xf32, #tpu.memory_space<vmem>>, %arg2: memref<128x128xf32, #tpu.memory_space<vmem>>, %arg3: memref<1x128xf32, #tpu.memory_space<vmem>>, %arg4: memref<128x128xf32, #tpu.memory_space<vmem>>, %arg5: memref<1x128xf32, #tpu.memory_space<vmem>>, %arg6: memref<128x4xf32, #tpu.memory_space<vmem>>, %arg7: memref<1x1xf32, #tpu.memory_space<smem>>, %arg8: memref<8x4xf32, #tpu.memory_space<vmem>>) attributes {dimension_semantics = [#tpu.dimension_semantics<parallel>], iteration_bounds = array<i64: 1>, scalar_prefetch = 0 : i64, scratch_operands = 0 : i64, tpu.core_type = #tpu.core_type<tc>, window_params = [{transform_indices = @transform_0, window_bounds = array<i64: 8, 128>}, {pipeline_mode = #tpu.pipeline_mode<synchronous>, transform_indices = @transform_1, window_bounds = array<i64: 128, 128>}, {pipeline_mode = #tpu.pipeline_mode<synchronous>, transform_indices = @transform_2, window_bounds = array<i64: 1, 128>}, {pipeline_mode = #tpu.pipeline_mode<synchronous>, transform_indices = @transform_3, window_bounds = array<i64: 128, 128>}, {pipeline_mode = #tpu.pipeline_mode<synchronous>, transform_indices = @transform_4, window_bounds = array<i64: 1, 128>}, {pipeline_mode = #tpu.pipeline_mode<synchronous>, transform_indices = @transform_5, window_bounds = array<i64: 128, 4>}, {transform_indices = @transform_6, window_bounds = array<i64: 1, 1>}, {transform_indices = @transform_7, window_bounds = array<i64: 8, 4>}]} {
    %c0 = arith.constant 0 : index
    %c0_0 = arith.constant 0 : index
    %0 = vector.load %arg1[%c0, %c0_0] : memref<8x128xf32, #tpu.memory_space<vmem>>, vector<8x128xf32>
    %c0_1 = arith.constant 0 : index
    %c0_2 = arith.constant 0 : index
    %1 = vector.load %arg2[%c0_1, %c0_2] : memref<128x128xf32, #tpu.memory_space<vmem>>, vector<128x128xf32>
    %cst = arith.constant dense<0.000000e+00> : vector<8x128xf32>
    %2 = tpu.matmul %0, %1, %cst {dimension_numbers = #tpu.dot_dimension_numbers<[1], [0], [0], [1], [0, 0, 1, 1], [], []>} : vector<8x128xf32>, vector<128x128xf32>, vector<8x128xf32> -> vector<8x128xf32>
    %c0_3 = arith.constant 0 : index
    %c0_4 = arith.constant 0 : index
    %3 = vector.load %arg3[%c0_3, %c0_4] : memref<1x128xf32, #tpu.memory_space<vmem>>, vector<1x128xf32>
    %4 = vector.broadcast %3 : vector<1x128xf32> to vector<8x128xf32>
    %5 = arith.addf %2, %4 : vector<8x128xf32>
    %cst_5 = arith.constant 0.000000e+00 : f32
    %6 = vector.broadcast %cst_5 : f32 to vector<8x128xf32>
    %7 = arith.maximumf %5, %6 : vector<8x128xf32>
    %c0_6 = arith.constant 0 : index
    %c0_7 = arith.constant 0 : index
    %8 = vector.load %arg4[%c0_6, %c0_7] : memref<128x128xf32, #tpu.memory_space<vmem>>, vector<128x128xf32>
    %cst_8 = arith.constant dense<0.000000e+00> : vector<8x128xf32>
    %9 = tpu.matmul %7, %8, %cst_8 {dimension_numbers = #tpu.dot_dimension_numbers<[1], [0], [0], [1], [0, 0, 1, 1], [], []>} : vector<8x128xf32>, vector<128x128xf32>, vector<8x128xf32> -> vector<8x128xf32>
    %c0_9 = arith.constant 0 : index
    %c0_10 = arith.constant 0 : index
    %10 = vector.load %arg5[%c0_9, %c0_10] : memref<1x128xf32, #tpu.memory_space<vmem>>, vector<1x128xf32>
    %11 = vector.broadcast %10 : vector<1x128xf32> to vector<8x128xf32>
    %12 = arith.addf %9, %11 : vector<8x128xf32>
    %cst_11 = arith.constant 0.000000e+00 : f32
    %13 = vector.broadcast %cst_11 : f32 to vector<8x128xf32>
    %14 = arith.maximumf %12, %13 : vector<8x128xf32>
    %c0_12 = arith.constant 0 : index
    %c0_13 = arith.constant 0 : index
    %15 = vector.load %arg6[%c0_12, %c0_13] : memref<128x4xf32, #tpu.memory_space<vmem>>, vector<128x4xf32>
    %cst_14 = arith.constant dense<0.000000e+00> : vector<8x4xf32>
    %16 = tpu.matmul %14, %15, %cst_14 {dimension_numbers = #tpu.dot_dimension_numbers<[1], [0], [0], [1], [0, 0, 1, 1], [], []>} : vector<8x128xf32>, vector<128x4xf32>, vector<8x4xf32> -> vector<8x4xf32>
    %c0_15 = arith.constant 0 : index
    %c0_16 = arith.constant 0 : index
    %17 = memref.load %arg7[%c0_15, %c0_16] : memref<1x1xf32, #tpu.memory_space<smem>>
    %18 = vector.broadcast %17 : f32 to vector<8x4xf32>
    %19 = arith.addf %16, %18 : vector<8x4xf32>
    %c0_17 = arith.constant 0 : index
    %c0_18 = arith.constant 0 : index
    %20 = vector.load %arg8[%c0_17, %c0_18] : memref<8x4xf32, #tpu.memory_space<vmem>>, vector<8x4xf32>
    tpu.vector_store %arg8[%c0_17, %c0_18], %19 {strides = array<i32>} : memref<8x4xf32, #tpu.memory_space<vmem>>, vector<8x4xf32>,
    return
  }
  func.func @transform_0(%arg0: i32) -> (i32, i32) {
    %c0_i32 = arith.constant 0 : i32
    %c0_i32_0 = arith.constant 0 : i32
    return %arg0, %c0_i32 : i32, i32
  }
  func.func @transform_1(%arg0: i32) -> (i32, i32) {
    %c0_i32 = arith.constant 0 : i32
    %c0_i32_0 = arith.constant 0 : i32
    %c0_i32_1 = arith.constant 0 : i32
    return %c0_i32, %c0_i32_0 : i32, i32
  }
  func.func @transform_2(%arg0: i32) -> (i32, i32) {
    %c0_i32 = arith.constant 0 : i32
    %c0_i32_0 = arith.constant 0 : i32
    %c0_i32_1 = arith.constant 0 : i32
    return %c0_i32, %c0_i32_0 : i32, i32
  }
  func.func @transform_3(%arg0: i32) -> (i32, i32) {
    %c0_i32 = arith.constant 0 : i32
    %c0_i32_0 = arith.constant 0 : i32
    %c0_i32_1 = arith.constant 0 : i32
    return %c0_i32, %c0_i32_0 : i32, i32
  }
  func.func @transform_4(%arg0: i32) -> (i32, i32) {
    %c0_i32 = arith.constant 0 : i32
    %c0_i32_0 = arith.constant 0 : i32
    %c0_i32_1 = arith.constant 0 : i32
    return %c0_i32, %c0_i32_0 : i32, i32
  }
  func.func @transform_5(%arg0: i32) -> (i32, i32) {
    %c0_i32 = arith.constant 0 : i32
    %c0_i32_0 = arith.constant 0 : i32
    %c0_i32_1 = arith.constant 0 : i32
    return %c0_i32, %c0_i32_0 : i32, i32
  }
  func.func @transform_6(%arg0: i32) -> (i32, i32) {
    %c0_i32 = arith.constant 0 : i32
    %c0_i32_0 = arith.constant 0 : i32
    %c0_i32_1 = arith.constant 0 : i32
    return %c0_i32, %c0_i32_0 : i32, i32
  }
  func.func @transform_7(%arg0: i32) -> (i32, i32) {
    %c0_i32 = arith.constant 0 : i32
    %c0_i32_0 = arith.constant 0 : i32
    return %arg0, %c0_i32 : i32, i32
  }
}

</mosaic_0001>

<bundles_post_ra>
// kernel: feed_forward_relevance.1
= control target key start
LH: loop header
LB: loop body
LE: loop exit
PB: predicated region body
PF: predicated region fallthrough
CT: control target
= control target key end

     0   :  { %v578_v3 = vmov 0.0|0.0   ;;  %vm579_vm0 = vmmov 0   ;;  %v580_v6 = vmov 0.0   ;;  %vm304_vm1 = vcmask 31744   ;;  %s810_s0 = inlined_call_operand.vmem [shape: f32[2,128], index: 0, kind: input, shape index: {}]   ;;  %s811_s1 = inlined_call_operand.vmem [shape: f32[128,128], index: 1, kind: input, shape index: {}]   ;;  %s812_s2 = inlined_call_operand.vmem [shape: f32[1,128], index: 2, kind: input, shape index: {}]   ;;  %s813_s3 = inlined_call_operand.vmem [shape: f32[128,128], index: 3, kind: input, shape index: {}]   ;;  %s814_s4 = inlined_call_operand.vmem [shape: f32[1,128], index: 4, kind: input, shape index: {}]   ;;  %s815_s5 = inlined_call_operand.vmem [shape: f32[128,4], index: 5, kind: input, shape index: {}]   ;;  %s816_s6 = inlined_call_operand.<no memory space> [shape: f32[1,1], index: 6, kind: input, shape index: {}]   ;;  %s817_s7 = inlined_call_operand.vmem [shape: f32[2,4], index: 7, kind: output, shape index: {}]  }
   0x1   :  { %v28_v0 = vld [vmem:[%s811_s1] sm:$0xff]  ;;  %v29_v1 = vld [vmem:[%s811_s1 + $0x8] sm:$0xff]  ;;  %v30_v2 = vld [vmem:[%s811_s1 + $0x10] sm:$0xff]  ;;  %503 = vmatprep.subr.bf16.mxu0 %v578_v3  ;;  %430 = vmatprep.mubr.msk.f32.mxu0 %vm579_vm0, %v580_v6 }
   0x2   :  { %v504_v4 = vpack.c.bf16 %v29_v1, %v28_v0  ;;  %v31_v5 = vld [vmem:[%s811_s1 + $0x18] sm:$0xff]  ;;  %527 = vmatprep.subr.bf16.mxu1 %v578_v3  ;;  %465 = vmatprep.mubr.msk.f32.mxu1 %vm579_vm0, %v580_v6  ;;  %v32_v8 = vld [vmem:[%s811_s1 + $0x20] sm:$0xff]  ;;  %v33_v9 = vld [vmem:[%s811_s1 + $0x28] sm:$0xff] }
   0x3   :  { %v507_v7 = vpack.c.bf16 %v31_v5, %v30_v2  ;;  %v122_v10 = vld [vmem:[%s813_s3] sm:$0xff]  ;;  %v123_v11 = vld [vmem:[%s813_s3 + $0x8] sm:$0xff]  ;;  %v124_v12 = vld [vmem:[%s813_s3 + $0x10] sm:$0xff]  ;;  %v510_v14 = vpack.c.bf16 %v33_v9, %v32_v8 }
   0x4   :  { %505 = vmatpush3.bf16.msra.mxu0 %v504_v4  ;;  %v125_v13 = vld [vmem:[%s813_s3 + $0x18] sm:$0xff]  ;;  %v528_v15 = vpack.c.bf16 %v123_v11, %v122_v10  ;;  %v34_v16 = vld [vmem:[%s811_s1 + $0x30] sm:$0xff]  ;;  %v126_v19 = vld [vmem:[%s813_s3 + $0x20] sm:$0xff] }
   0x5   :  { %506 = vmatprep.subr.bf16.mxu0 %v578_v3  ;;  %v35_v17 = vld [vmem:[%s811_s1 + $0x38] sm:$0xff]  ;;  %v531_v18 = vpack.c.bf16 %v125_v13, %v124_v12  ;;  %v127_v20 = vld [vmem:[%s813_s3 + $0x28] sm:$0xff]  ;;  %v36_v22 = vld [vmem:[%s811_s1 + $0x40] sm:$0xff] }
   0x6   :  { %529 = vmatpush3.bf16.msra.mxu1 %v528_v15  ;;  %v513_v21 = vpack.c.bf16 %v35_v17, %v34_v16  ;;  %v37_v23 = vld [vmem:[%s811_s1 + $0x48] sm:$0xff]  ;;  %v534_v24 = vpack.c.bf16 %v127_v20, %v126_v19  ;;  %v128_v25 = vld [vmem:[%s813_s3 + $0x30] sm:$0xff]  ;;  %v129_v26 = vld [vmem:[%s813_s3 + $0x38] sm:$0xff] }
   0x7   :  { %530 = vmatprep.subr.bf16.mxu1 %v578_v3  ;;  %v516_v27 = vpack.c.bf16 %v37_v23, %v36_v22  ;;  %v38_v28 = vld [vmem:[%s811_s1 + $0x50] sm:$0xff]  ;;  %v39_v29 = vld [vmem:[%s811_s1 + $0x58] sm:$0xff]  ;;  %v537_v30 = vpack.c.bf16 %v129_v26, %v128_v25  ;;  %v130_v31 = vld [vmem:[%s813_s3 + $0x40] sm:$0xff] }
   0x8   :  { %508 = vmatpush3.bf16.msra.mxu0 %v507_v7  ;;  %v131_v32 = vld [vmem:[%s813_s3 + $0x48] sm:$0xff]  ;;  %v519_v33 = vpack.c.bf16 %v39_v29, %v38_v28  ;;  %v40_v34 = vld [vmem:[%s811_s1 + $0x60] sm:$0xff]  ;;  %v132_v37 = vld [vmem:[%s813_s3 + $0x50] sm:$0xff] }
   0x9   :  { %509 = vmatprep.subr.bf16.mxu0 %v578_v3  ;;  %v41_v35 = vld [vmem:[%s811_s1 + $0x68] sm:$0xff]  ;;  %v540_v36 = vpack.c.bf16 %v131_v32, %v130_v31  ;;  %v133_v38 = vld [vmem:[%s813_s3 + $0x58] sm:$0xff]  ;;  %v42_v40 = vld [vmem:[%s811_s1 + $0x70] sm:$0xff] }
   0xa   :  { %532 = vmatpush3.bf16.msra.mxu1 %v531_v18  ;;  %v522_v39 = vpack.c.bf16 %v41_v35, %v40_v34  ;;  %v43_v41 = vld [vmem:[%s811_s1 + $0x78] sm:$0xff]  ;;  %v543_v42 = vpack.c.bf16 %v133_v38, %v132_v37  ;;  %v134_v43 = vld [vmem:[%s813_s3 + $0x60] sm:$0xff]  ;;  %v135_v44 = vld [vmem:[%s813_s3 + $0x68] sm:$0xff] }
   0xb   :  { %533 = vmatprep.subr.bf16.mxu1 %v578_v3  ;;  %v525_v45 = vpack.c.bf16 %v43_v41, %v42_v40  ;;  %v546_v46 = vpack.c.bf16 %v135_v44, %v134_v43  ;;  %v27_v47 = vld [vmem:[%s810_s0] sm:$0xff]  ;;  %v136_v48 = vld [vmem:[%s813_s3 + $0x70] sm:$0xff]  ;;  %v137_v49 = vld [vmem:[%s813_s3 + $0x78] sm:$0xff] }
   0xc   :  { %511 = vmatpush3.bf16.msra.mxu0 %v510_v14  ;;  %v549_v50 = vpack.c.bf16 %v137_v49, %v136_v48  ;;  %v216_v51 = vld [vmem:[%s815_s5] sm:$0xff]  ;;  %v217_v52 = vld [vmem:[%s815_s5 + $0x8] sm:$0xff]  ;;  %v218_v53 = vld [vmem:[%s815_s5 + $0x10] sm:$0xff] }
   0xd   :  { %512 = vmatprep.subr.bf16.mxu0 %v578_v3  ;;  %v552_v54 = vpack.c.bf16 %v217_v52, %v216_v51  ;;  %v219_v55 = vld [vmem:[%s815_s5 + $0x18] sm:$0xff]  ;;  %v220_v57 = vld [vmem:[%s815_s5 + $0x20] sm:$0xff]  ;;  %v221_v58 = vld [vmem:[%s815_s5 + $0x28] sm:$0xff] }
   0xe   :  { %535 = vmatpush3.bf16.msra.mxu1 %v534_v24  ;;  %v555_v56 = vpack.c.bf16 %v219_v55, %v218_v53  ;;  %v558_v59 = vpack.c.bf16 %v221_v58, %v220_v57  ;;  %v222_v60 = vld [vmem:[%s815_s5 + $0x30] sm:$0xff]  ;;  %v223_v61 = vld [vmem:[%s815_s5 + $0x38] sm:$0xff]  ;;  %v224_v63 = vld [vmem:[%s815_s5 + $0x40] sm:$0xff] }
   0xf   :  { %536 = vmatprep.subr.bf16.mxu1 %v578_v3  ;;  %v561_v62 = vpack.c.bf16 %v223_v61, %v222_v60  ;;  %v225_v0 = vld [vmem:[%s815_s5 + $0x48] sm:$0xff]  ;;  %v226_v2 = vld [vmem:[%s815_s5 + $0x50] sm:$0xff]  ;;  %v227_v4 = vld [vmem:[%s815_s5 + $0x58] sm:$0xff] }
  0x10   :  { %514 = vmatpush3.bf16.msra.mxu0 %v513_v21  ;;  %v564_v1 = vpack.c.bf16 %v225_v0, %v224_v63  ;;  %v567_v5 = vpack.c.bf16 %v227_v4, %v226_v2  ;;  %v229_v7 = vld [vmem:[%s815_s5 + $0x68] sm:$0xff]  ;;  %v345_v9 = vld [vmem:[%s812_s2] ss:$0 sm:$0xff]  ;;  %v230_v14 = vld [vmem:[%s815_s5 + $0x70] sm:$0xff]  ;;  %v233_v21 = vstv %s816_s6 }
  0x11   :  { %515 = vmatprep.subr.bf16.mxu0 %v578_v3  ;;  %v231_v15 = vld [vmem:[%s815_s5 + $0x78] sm:$0xff] }
  0x12   :  { %538 = vmatpush3.bf16.msra.mxu1 %v537_v30  ;;  %v573_v16 = vpack.c.bf16 %v231_v15, %v230_v14 }
  0x13   :  { %539 = vmatprep.subr.bf16.mxu1 %v578_v3 }
  0x14   :  { %517 = vmatpush3.bf16.msra.mxu0 %v516_v27 }
  0x15   :  { %518 = vmatprep.subr.bf16.mxu0 %v578_v3 }
  0x16   :  { %541 = vmatpush3.bf16.msra.mxu1 %v540_v36 }
  0x17   :  { %542 = vmatprep.subr.bf16.mxu1 %v578_v3 }
  0x18   :  { %520 = vmatpush3.bf16.msra.mxu0 %v519_v33 }
  0x19   :  { %521 = vmatprep.subr.bf16.mxu0 %v578_v3 }
  0x1a   :  { %544 = vmatpush3.bf16.msra.mxu1 %v543_v42 }
  0x1b   :  { %545 = vmatprep.subr.bf16.mxu1 %v578_v3 }
  0x1c   :  { %523 = vmatpush3.bf16.msra.mxu0 %v522_v39 }
  0x1d   :  { %524 = vmatprep.subr.bf16.mxu0 %v578_v3 }
  0x1e   :  { %547 = vmatpush3.bf16.msra.mxu1 %v546_v46 }
  0x1f   :  { %548 = vmatprep.subr.bf16.mxu1 %v578_v3 }
  0x20   :  { %526 = vmatpush3.bf16.msra.mxu0 %v525_v45 }
  0x21   :  { %551 = vmatprep.subr.bf16.mxu0 %v578_v3 }
  0x22   :  { %550 = vmatpush3.bf16.msra.mxu1 %v549_v50 }
  0x23   :  { %431 = vmatmul.mubr.f32.vlgmr.msra.gmra.mrb[0].mxu0 %v27_v47 }
  0x24   :  { %500 = vmatprep.mubr.msk.f32.mxu0 %vm579_vm0, %v580_v6  ;;  %553 = vmatpush3.bf16.msra.mxu0 %v552_v54  ;;  %v228_v6 = vld [vmem:[%s815_s5 + $0x60] sm:$0xff] }
  0x25   :  { %554 = vmatprep.subr.bf16.mxu0 %v578_v3  ;;  %v570_v8 = vpack.c.bf16 %v229_v7, %v228_v6 }
  0x28   :  { %556 = vmatpush3.bf16.msra.mxu0 %v555_v56 }
  0x29   :  { %557 = vmatprep.subr.bf16.mxu0 %v578_v3 }
  0x2c   :  { %559 = vmatpush3.bf16.msra.mxu0 %v558_v59 }
  0x2d   :  { %560 = vmatprep.subr.bf16.mxu0 %v578_v3 }
  0x30   :  { %562 = vmatpush3.bf16.msra.mxu0 %v561_v62 }
  0x31   :  { %563 = vmatprep.subr.bf16.mxu0 %v578_v3 }
  0x34   :  { %565 = vmatpush3.bf16.msra.mxu0 %v564_v1 }
  0x35   :  { %566 = vmatprep.subr.bf16.mxu0 %v578_v3 }
  0x38   :  { %568 = vmatpush3.bf16.msra.mxu0 %v567_v5 }
  0x39   :  { %569 = vmatprep.subr.bf16.mxu0 %v578_v3 }
  0x3c   :  { %571 = vmatpush3.bf16.msra.mxu0 %v570_v8 }
  0x3d   :  { %572 = vmatprep.subr.bf16.mxu0 %v578_v3  ;;  %v346_v3 = vld [vmem:[%s814_s4] ss:$0 sm:$0xff] }
  0x40   :  { %574 = vmatpush3.bf16.msra.mxu0 %v573_v16 }
  0xf6   :  { %v117_v10 = vpop.f32.mrb[0].mxu0 }
  0xf7   :  { %v118_v11 = vadd.f32 %v345_v9, %v117_v10  ;;  %v432_v12 = vpop.f32.mrb[1].mxu0 }
  0xf9   :  { %v121_v13 = vmax.f32 %v118_v11, 0.0 }
  0xfb   :  { %466 = vmatmul.mubr.f32.vlgmr.msra.gmra.mrb[0].mxu1 %v121_v13 }
 0x1ce   :  { %v211_v17 = vpop.f32.mrb[0].mxu1 }
 0x1cf   :  { %v212_v18 = vadd.f32 %v346_v3, %v211_v17  ;;  %v467_v19 = vpop.f32.mrb[1].mxu1 }
 0x1d1   :  { %v215_v20 = vmax.f32 %v212_v18, 0.0 }
 0x1d3   :  { %501 = vmatmul.mubr.f32.vlgmr.msra.gmra.mrb[2].mxu0 %v215_v20 }
 0x2a6   :  { %v300_v22 = vpop.f32.mrb[2].mxu0 }
 0x2a7   :  { %v301_v23 = vadd.f32 %v300_v22, %v233_v21  ;;  %v502_v24 = vpop.f32.mrb[3].mxu0 }
 0x2a9   :  { %305 = vst.msk [vmem:[#allocation3] sm:$0xff] %vm304_vm1, %v301_v23 }
 0x2b0   :  { %v323_v25 = vld [vmem:[#allocation3] sm:$0x3] }
 0x2b1   :  { %324 = vst [vmem:[%s817_s7] sm:$0x3] %v323_v25 }

</bundles_post_ra>
